<compile_context>
chip_gen: v7x
topology: tpu7x:2x2x1
jax: 0.10.0
libtpu: 0.0.40
codegen_flags: <defaults>
</compile_context>

<pallas_src>
import jax
import jax.numpy as jnp
from jax.experimental import pallas as pl
from jax.experimental.pallas import tpu as pltpu


def _tokenizer_kernel(x_ref, wb_ref, o_ref):
    # x_ref : (TB, F)     scalar features for this batch tile
    # wb_ref: (2, F, D)   packed [weight; bias], resident across the grid
    # o_ref : (TB, F*D)   lane-dense flattened output tile
    x = x_ref[...].astype(jnp.float32)            # (TB, F)
    w = wb_ref[0].astype(jnp.float32)             # (F, D)
    b = wb_ref[1].astype(jnp.float32)             # (F, D)
    tb = x.shape[0]
    # Broadcast FMA (the whole hot path of this module), then flatten the
    # token axes so the store hits the lane-dense (TB, F*D) output buffer.
    y = x[:, :, None] * w[None, :, :] + b[None, :, :]       # (TB, F, D) f32
    o_ref[...] = y.reshape(tb, -1).astype(o_ref.dtype)


def _round_down_to(v, m):
    return max(m, (v // m) * m)


def _choose_batch_tile(batch, f, d, out_itemsize, vmem_tile_budget):
    """Largest multiple-of-8 row tile whose double-buffered working set fits
    the budget; capped so the grid keeps >= 2 steps (v7x megacore)."""
    fd = f * d
    bytes_per_row = 2 * fd * out_itemsize + 2 * f * 4   # dbl-buffered out + x
    tb = _round_down_to(max(8, vmem_tile_budget // max(1, bytes_per_row)), 8)
    b8 = pl.cdiv(batch, 8) * 8
    tb = min(tb, b8)
    if b8 >= 16 and tb > b8 // 2:
        tb = _round_down_to(b8 // 2, 8)
    return tb


def numerical_feature_tokenizer(x, weight, bias=None, *, out_dtype=None,
                                vmem_tile_budget=16 * 1024 * 1024):
    """x: (B, F); weight/bias: (F, D) -> (B, F, D) = weight[None]*x[...,None]+bias[None]."""
    B, F = x.shape
    F2, D = weight.shape
    assert F == F2, "weight must be (in_features, d_token)"
    if bias is None:                      # module supports bias=False
        bias = jnp.zeros_like(weight)
    assert bias.shape == (F, D)
    out_dtype = x.dtype if out_dtype is None else jnp.dtype(out_dtype)

    FD = F * D
    tb = _choose_batch_tile(B, F, D, jnp.dtype(out_dtype).itemsize,
                            vmem_tile_budget)

    # Pad ragged batches so the 1-D grid tiles evenly; sliced off at the end.
    B_pad = pl.cdiv(B, tb) * tb
    x_in = jnp.pad(x, ((0, B_pad - B), (0, 0))) if B_pad != B else x

    # Pack weight and bias into a single small resident operand.
    wb = jnp.stack([weight, bias], axis=0)                   # (2, F, D)

    bytes_accessed = (B_pad * F * x_in.dtype.itemsize
                      + wb.size * wb.dtype.itemsize
                      + B_pad * FD * out_dtype.itemsize)

    out_flat = pl.pallas_call(
        _tokenizer_kernel,
        out_shape=jax.ShapeDtypeStruct((B_pad, FD), out_dtype),
        grid=(B_pad // tb,),
        in_specs=[
            pl.BlockSpec((tb, F), lambda i: (i, 0)),         # x tile (pipelined)
            pl.BlockSpec((2, F, D), lambda i: (0, 0, 0)),    # weight/bias (resident)
        ],
        out_specs=pl.BlockSpec((tb, FD), lambda i: (i, 0)),  # lane-dense output
        compiler_params=pltpu.CompilerParams(
            dimension_semantics=("parallel",),
            vmem_limit_bytes=32 * 1024 * 1024,
        ),
        cost_estimate=pl.CostEstimate(
            flops=2 * B_pad * FD,
            transcendentals=0,
            bytes_accessed=bytes_accessed,
        ),
    )(x_in, wb)

    # Free metadata ops back to the module's (B, F, D) layout.
    return out_flat[:B].reshape(B, F, D)


if __name__ == "__main__":
    # Small shapes consistent with the module: 16 samples, 8 numerical
    # features, token size 32.
    B, F, D = 16, 8, 32

    key = jax.random.PRNGKey(0)
    kx, kw, kb = jax.random.split(key, 3)

    # Deterministic parameter init mirroring _TokenInitialization 'normal':
    # N(0, 1/sqrt(d_token)) per element (shape matches nn.Parameter(F, D)).
    std = 1.0 / jnp.sqrt(jnp.float32(D))
    weight = jax.random.normal(kw, (F, D), dtype=jnp.float32) * std
    bias = jax.random.normal(kb, (F, D), dtype=jnp.float32) * std
    x = jax.random.normal(kx, (B, F), dtype=jnp.float32)

    out = numerical_feature_tokenizer(x, weight, bias)
    out = jax.block_until_ready(out)

    # Pure-JAX reference for correctness.
    ref = weight[None] * x[..., None] + bias[None]
    assert out.shape == (B, F, D)
    assert jnp.allclose(out, ref, atol=1e-6, rtol=1e-6)

    # Ragged-batch / no-bias paths.
    out_ragged = jax.block_until_ready(
        numerical_feature_tokenizer(x[:13], weight, None))
    assert jnp.allclose(out_ragged, weight[None] * x[:13, :, None],
                        atol=1e-6, rtol=1e-6)

    print("KERNEL_OK")
</pallas_src>

<mosaic_0001>
module attributes {stable_mosaic.version = 11 : i64} {
  func.func @_tokenizer_kernel(%arg0: i32, %arg1: memref<8x8xf32, #tpu.memory_space<vmem>>, %arg2: memref<2x8x32xf32, #tpu.memory_space<vmem>>, %arg3: memref<8x256xf32, #tpu.memory_space<vmem>>) attributes {dimension_semantics = [#tpu.dimension_semantics<parallel>], iteration_bounds = array<i64: 2>, scalar_prefetch = 0 : i64, scratch_operands = 0 : i64, tpu.core_type = #tpu.core_type<tc>, window_params = [{transform_indices = @transform_0, window_bounds = array<i64: 8, 8>}, {pipeline_mode = #tpu.pipeline_mode<synchronous>, transform_indices = @transform_1, window_bounds = array<i64: 2, 8, 32>}, {transform_indices = @transform_2, window_bounds = array<i64: 8, 256>}]} {
    %c0 = arith.constant 0 : index
    %c0_0 = arith.constant 0 : index
    %0 = vector.load %arg1[%c0, %c0_0] : memref<8x8xf32, #tpu.memory_space<vmem>>, vector<8x8xf32>
    %c0_1 = arith.constant 0 : index
    %c0_2 = arith.constant 0 : index
    %c0_3 = arith.constant 0 : index
    %1 = vector.load %arg2[%c0_1, %c0_2, %c0_3] : memref<2x8x32xf32, #tpu.memory_space<vmem>>, vector<1x8x32xf32>
    %2 = vector.shape_cast %1 : vector<1x8x32xf32> to vector<8x32xf32>
    %c1 = arith.constant 1 : index
    %c0_4 = arith.constant 0 : index
    %c0_5 = arith.constant 0 : index
    %3 = vector.load %arg2[%c1, %c0_4, %c0_5] : memref<2x8x32xf32, #tpu.memory_space<vmem>>, vector<1x8x32xf32>
    %4 = vector.shape_cast %3 : vector<1x8x32xf32> to vector<8x32xf32>
    %5 = vector.shape_cast %0 : vector<8x8xf32> to vector<8x8x1xf32>
    %6 = vector.shape_cast %2 : vector<8x32xf32> to vector<1x8x32xf32>
    %7 = vector.broadcast %5 : vector<8x8x1xf32> to vector<8x8x32xf32>
    %8 = vector.broadcast %6 : vector<1x8x32xf32> to vector<8x8x32xf32>
    %9 = arith.mulf %7, %8 : vector<8x8x32xf32>
    %10 = vector.shape_cast %4 : vector<8x32xf32> to vector<1x8x32xf32>
    %11 = vector.broadcast %10 : vector<1x8x32xf32> to vector<8x8x32xf32>
    %12 = arith.addf %9, %11 : vector<8x8x32xf32>
    %13 = vector.shape_cast %12 : vector<8x8x32xf32> to vector<8x256xf32>
    %c0_6 = arith.constant 0 : index
    %c0_7 = arith.constant 0 : index
    %14 = vector.load %arg3[%c0_6, %c0_7] : memref<8x256xf32, #tpu.memory_space<vmem>>, vector<8x256xf32>
    tpu.vector_store %arg3[%c0_6, %c0_7], %13 {strides = array<i32>} : memref<8x256xf32, #tpu.memory_space<vmem>>, vector<8x256xf32>,
    return
  }
  func.func @transform_0(%arg0: i32) -> (i32, i32) {
    %c0_i32 = arith.constant 0 : i32
    %c0_i32_0 = arith.constant 0 : i32
    return %arg0, %c0_i32 : i32, i32
  }
  func.func @transform_1(%arg0: i32) -> (i32, i32, i32) {
    %c0_i32 = arith.constant 0 : i32
    %c0_i32_0 = arith.constant 0 : i32
    %c0_i32_1 = arith.constant 0 : i32
    %c0_i32_2 = arith.constant 0 : i32
    return %c0_i32, %c0_i32_0, %c0_i32_1 : i32, i32, i32
  }
  func.func @transform_2(%arg0: i32) -> (i32, i32) {
    %c0_i32 = arith.constant 0 : i32
    %c0_i32_0 = arith.constant 0 : i32
    return %arg0, %c0_i32 : i32, i32
  }
}

</mosaic_0001>

<bundles_post_ra>
// kernel: tpu_custom_call.1
= control target key start
LH: loop header
LB: loop body
LE: loop exit
PB: predicated region body
PF: predicated region fallthrough
CT: control target
= control target key end

     0   :  { %7 = vsyncpa [#allocation3], 0  ;;  %s720_s0 = inlined_call_operand.vmem [shape: f32[16,8], index: 0, kind: input, shape index: {}]   ;;  %s721_s1 = inlined_call_operand.vmem [shape: f32[2,8,32], index: 1, kind: input, shape index: {}]   ;;  %s722_s2 = inlined_call_operand.hbm [shape: f32[16,256], index: 2, kind: output, shape index: {}]  }
   0x1   :  { %9 = vsyncpa [#allocation3 + $0x1], 0  ;;  %s602_s9 = smov 0   ;;  %s604_s10 = smov 0  }
   0x2   :  { %s606_s11 = smov 0   ;;  %s608_s12 = smov 0  }
   0x3 LB: > { %s623_s13 = sadd.s32 4294967295, %s579_s12   ;;  %s460_s14 = sadd.s32 4294967294, %s579_s12   ;;  %s579_s12 = sphi %s608_s12, %s728_s12   ;;  %s575_s11 = sphi %s606_s11, %s727_s11   ;;  %s571_s10 = sphi %s604_s10, %s726_s10   ;;  %s567_s9 = sphi %s602_s9, %s725_s9  }
   0x4   : > { %s627_s15 = sadd.s32 1, %s579_s12   ;;  %s69_s16 = sadd.s32 1, %s575_s11 }
   0x5   : > { %s66_s17 = ssub.s32 %s579_s12, %s627_s15  ;;  %p79_p0 = scmp.ne.s32.totalorder %s575_s11, %s571_s10 }
   0x6   : > { %p67_p1 = scmp.eq.s32.totalorder %s66_s17, 0  ;;  %p80_p2 = scmp.eq.s32.totalorder %s623_s13, 1 }
   0x7   : > { %p85_p3 = scmp.ne.s32.totalorder %s571_s10, %s567_s9  ;;  %p86_p4 = scmp.eq.s32.totalorder %s460_s14, 1 }
   0x8   : > { %s638_s18 = scalar_select %p67_p1, %s575_s11, %s69_s16  }
   0x9   : > { %p640_p5 = por %p80_p2, %p79_p0  ;;  %p644_p6 = por %p86_p4, %p85_p3 }
   0xa   : > { %p463_p7 = scmp.ge.s32.totalorder %s579_s12, 1  ;;  %p114_p8 = scmp.lt.s32.totalorder %s579_s12, 3 }
   0xc   : > { %p115_p9 = pnand %p463_p7, %p114_p8 }
   0xd   : > { %p135_p10 = scmp.lt.s32.totalorder (!%p115_p9), %s623_s13, 1  ;;  %v143_v0 = vlaneseq (!%p115_p9)  ;;  %v140_v21 = vld [vmem:[%s721_s1] sm:$0xff] (!%p115_p9)  ;;  %v581_v23 = vmov (!%p115_p9), 1983009808   ;;  %v466_v28 = vld [vmem:[%s721_s1 + $0x8] sm:$0xff] (!%p115_p9)  ;;  %s583_s30 = smov (!%p115_p9), 32  }
   0xe   : > { %118 = sbr.rel (%p115_p9) target bundleno = 307 (0x133), region = 28  ;;  %v218_v24 = vunpack.c.l.s4 (!%p115_p9), %v581_v23  ;;  %v582_v40 = vmov (!%p115_p9), 1934713408   ;;  %s584_s3 = smov (!%p115_p9), 64   ;;  %vm375_vm0 = vcmask (!%p115_p9), 261120   ;;  %vm377_vm1 = vcmask (!%p115_p9), 523264  }
   0xf   : > { %v652_v1 = vshrl.u32 (!%p115_p9), %v143_v0, 7  ;;  %v282_v41 = vunpack.c.l.s4 (!%p115_p9), %v582_v40  ;;  %s585_s4 = smov (!%p115_p9), 96   ;;  %s132_s5 = sand.u32 (!%p115_p9), 1, %s571_s10   ;;  %vm379_vm2 = vcmask (!%p115_p9), 785408  }
  0x10   : > { %v219_v34 = vunpack.c.0.s8 (!%p115_p9), %v218_v24  ;;  %s464_s6 = sshll.u32 (!%p115_p9), %s132_s5, 4  ;;  %s472_s7 = sshll.u32 (!%p115_p9), %s623_s13, 8 }
  0x11   : > { %v159_v2 = vsub.s32 (!%p115_p9), 2, %v652_v1  ;;  %v145_v3 = vsub.s32 (!%p115_p9), 0, %v652_v1  ;;  %v166_v4 = vsub.s32 (!%p115_p9), 3, %v652_v1  ;;  %v152_v5 = vsub.s32 (!%p115_p9), 1, %v652_v1  ;;  %s134_s8 = scalar_lea.vmem (!%p115_p9), [#allocation2], %s464_s6  ;;  %s586_s23 = smov (!%p115_p9), [#allocation2]  }
  0x12   : > { %v180_v11 = vsub.s32 (!%p115_p9), 5, %v652_v1  ;;  %v173_v12 = vsub.s32 (!%p115_p9), 4, %v652_v1  ;;  %v194_v15 = vsub.s32 (!%p115_p9), 7, %v652_v1  ;;  %v187_v16 = vsub.s32 (!%p115_p9), 6, %v652_v1  ;;  %s401_s14 = sshll.u32 (!%p115_p9), %s134_s8, 4  ;;  %s521_s24 = sshll.u32 (!%p115_p9), %s586_s23, 4  ;;  %s680_s14 = int_to_ptr.vmem [resolvable:$true] %s401_s14  ;;  %s522_s24 = int_to_ptr.vmem [resolvable:$false] %s521_s24 }
  0x13   : > { %v222_v44 = vsub.s32 (!%p115_p9), %v219_v34, %v652_v1  ;;  %v283_v53 = vunpack.c.0.s8 (!%p115_p9), %v282_v41  ;;  %p524_p0 = scmp.lt.s32.totalorder (!%p115_p9), %s680_s14, %s522_s24 }
  0x15   : > { %s136_s21 = scalar_select %p135_p10, %s623_s13, 1  ;;  %v286_v0 = vsub.s32 %v283_v53, %v652_v1 }
  0x16   : > { %s387_s13 = scalar_lea.sflag [#allocation3], %s132_s5 }
  0x17   : > { %s465_s22 = sshll.u32 %s136_s21, 3  ;;  %s678_s21 = scalar_lea.hbm %s722_s2, %s472_s7 }
  0x18   : > { %s138_s25 = scalar_lea.vmem %s720_s0, %s465_s22  ;;  %s517_s22 = scalar_lea.vmem %s680_s14, 256 }
  0x19   : > { %v139_v6 = vld [vmem:[%s138_s25] sm:$0xff]  ;;  %p518_p11 = scmp.ne.s32.totalorder %s680_s14, %s517_s22  ;;  %s523_s25 = scalar_lea.vmem %s522_s24, 512 }
  0x1a   : > { %v160_v7 = vrot.slane %v139_v6, %v159_v2  ;;  %v146_v8 = vrot.slane %v139_v6, %v145_v3  ;;  %v167_v9 = vrot.slane %v139_v6, %v166_v4  ;;  %v153_v10 = vrot.slane %v139_v6, %v152_v5  ;;  %p525_p1 = scmp.lt.s32.totalorder %s523_s25, %s517_s22 }
  0x1b   : > { %v181_v13 = vrot.slane %v139_v6, %v180_v11  ;;  %v174_v14 = vrot.slane %v139_v6, %v173_v12  ;;  %v195_v17 = vrot.slane %v139_v6, %v194_v15  ;;  %v188_v18 = vrot.slane %v139_v6, %v187_v16  ;;  %p519_p12 = pnand %p518_p11, %p640_p5 }
  0x1c   : > { %162 = vbcast.lane.b32.xlu1 %v160_v7, 256  ;;  %148 = vbcast.lane.b32.xlu0 %v146_v8, 256  ;;  %p526_p2 = por %p525_p1, %p524_p0 }
  0x1d   : > { %p520_p13 = pneg %p519_p12 }
  0x1f   : > { %p527_p3 = pnand %p526_p2, %p520_p13 }
  0x20   : > { %169 = vbcast.lane.b32.xlu1 %v167_v9, 256  ;;  %155 = vbcast.lane.b32.xlu0 %v153_v10, 256 }
  0x24   : > { %183 = vbcast.lane.b32.xlu1 %v181_v13, 256  ;;  %176 = vbcast.lane.b32.xlu0 %v174_v14, 256 }
  0x28   : > { %197 = vbcast.lane.b32.xlu1 %v195_v17, 256  ;;  %190 = vbcast.lane.b32.xlu0 %v188_v18, 256 }
  0x8e   : > { %v163_v19 = vpop.permute.xlu1 %162  ;;  %v149_v20 = vpop.permute.xlu0 %148 }
  0x8f   : > { %v201_v22 = vmul.f32 %v163_v19, %v140_v21  ;;  %v199_v25 = vmul.f32 %v149_v20, %v140_v21 }
  0x91   : > { %v209_v33 = vadd.f32 %v466_v28, %v201_v22  ;;  %v207_v35 = vadd.f32 %v466_v28, %v199_v25 }
  0x92   : > { %v170_v26 = vpop.permute.xlu1 %169  ;;  %v156_v27 = vpop.permute.xlu0 %155 }
  0x93   : > { %v202_v29 = vmul.f32 %v170_v26, %v140_v21  ;;  %v200_v30 = vmul.f32 %v156_v27, %v140_v21  ;;  %v215_v45 = vcombine.low %v207_v35, %v209_v33  ;;  %v216_v46 = vcombine.high %v207_v35, %v209_v33 }
  0x95   : > { %v210_v31 = vadd.f32 %v466_v28, %v202_v29  ;;  %v208_v32 = vadd.f32 %v466_v28, %v200_v30  ;;  %v223_v58 = vrot.slane %v215_v45, %v222_v44  ;;  %v230_v59 = vrot.slane %v216_v46, %v222_v44 }
  0x96   : > { %v184_v36 = vpop.permute.xlu1 %183  ;;  %v177_v37 = vpop.permute.xlu0 %176 }
  0x97   : > { %v231_v38 = vcombine.low %v208_v32, %v210_v31  ;;  %v232_v39 = vcombine.high %v208_v32, %v210_v31  ;;  %v204_v42 = vmul.f32 %v184_v36, %v140_v21  ;;  %v203_v43 = vmul.f32 %v177_v37, %v140_v21 }
  0x99   : > { %v239_v51 = vrot.slane %v231_v38, %v222_v44  ;;  %v246_v52 = vrot.slane %v232_v39, %v222_v44  ;;  %v212_v54 = vadd.f32 %v466_v28, %v204_v42  ;;  %v211_v55 = vadd.f32 %v466_v28, %v203_v43 }
  0x9a   : > { %v198_v47 = vpop.permute.xlu1 %197  ;;  %v191_v48 = vpop.permute.xlu0 %190 }
  0x9b   : > { %v206_v49 = vmul.f32 %v198_v47, %v140_v21  ;;  %v205_v50 = vmul.f32 %v191_v48, %v140_v21  ;;  %v295_v2 = vcombine.low %v230_v59, %v246_v52  ;;  %v279_v3 = vcombine.low %v223_v58, %v239_v51 }
  0x9c   : > { %v296_v12 = vcombine.high %v230_v59, %v246_v52  ;;  %v280_v13 = vcombine.high %v223_v58, %v239_v51 }
  0x9d   : > { %v214_v56 = vadd.f32 %v466_v28, %v206_v49  ;;  %v213_v57 = vadd.f32 %v466_v28, %v205_v50  ;;  %v303_v14 = vrot.slane %v295_v2, %v286_v0  ;;  %v287_v16 = vrot.slane %v279_v3, %v286_v0 }
  0x9e   : > { %v310_v23 = vrot.slane %v296_v12, %v286_v0  ;;  %v294_v24 = vrot.slane %v280_v13, %v286_v0 }
  0x9f   : > { %v263_v60 = vcombine.low %v212_v54, %v214_v56  ;;  %v264_v61 = vcombine.high %v212_v54, %v214_v56  ;;  %v247_v62 = vcombine.low %v211_v55, %v213_v57  ;;  %v248_v63 = vcombine.high %v211_v55, %v213_v57 }
  0xa1   : > { %v271_v4 = vrot.slane %v263_v60, %v222_v44  ;;  %v278_v5 = vrot.slane %v264_v61, %v222_v44  ;;  %v255_v6 = vrot.slane %v247_v62, %v222_v44  ;;  %v262_v7 = vrot.slane %v248_v63, %v222_v44 }
  0xa3   : > { %v327_v8 = vcombine.low %v262_v7, %v278_v5  ;;  %v311_v9 = vcombine.low %v255_v6, %v271_v4  ;;  %v328_v10 = vcombine.high %v262_v7, %v278_v5  ;;  %v312_v11 = vcombine.high %v255_v6, %v271_v4 }
  0xa5   : > { %v335_v15 = vrot.slane %v327_v8, %v286_v0  ;;  %v319_v17 = vrot.slane %v311_v9, %v286_v0  ;;  %v342_v20 = vrot.slane %v328_v10, %v286_v0  ;;  %v326_v1 = vrot.slane %v312_v11, %v286_v0 }
  0xa7   : > { %v348_v18 = vcombine.high %v303_v14, %v335_v15  ;;  %v344_v19 = vcombine.high %v287_v16, %v319_v17  ;;  %v347_v21 = vcombine.low %v303_v14, %v335_v15  ;;  %v343_v22 = vcombine.low %v287_v16, %v319_v17 }
  0xa8   : > { %v349_v25 = vcombine.low %v310_v23, %v342_v20  ;;  %v345_v26 = vcombine.low %v294_v24, %v326_v1  ;;  %v350_v27 = vcombine.high %v310_v23, %v342_v20  ;;  %v346_v28 = vcombine.high %v294_v24, %v326_v1 }
  0xa9   : > { %364 = vrot.lane.b32.xlu1 %v348_v18, %s583_s30  ;;  %352 = vrot.lane.b32.xlu0 %v344_v19, %s583_s30 }
  0xad   : > { %368 = vrot.lane.b32.xlu1 %v349_v25, %s584_s3  ;;  %356 = vrot.lane.b32.xlu0 %v345_v26, %s584_s3 }
  0xb1   : > { %372 = vrot.lane.b32.xlu1 %v350_v27, %s585_s4  ;;  %360 = vrot.lane.b32.xlu0 %v346_v28, %s585_s4 }
 0x11b   : > { %v365_v29 = vpop.permute.xlu1 %364  ;;  %v353_v30 = vpop.permute.xlu0 %352 }
 0x11c   : > { %v381_v33 = vsel %vm375_vm0, %v347_v21, %v365_v29  ;;  %v376_v34 = vsel %vm375_vm0, %v343_v22, %v353_v30 }
 0x11f   : > { %v369_v31 = vpop.permute.xlu1 %368  ;;  %v357_v32 = vpop.permute.xlu0 %356 }
 0x120   : > { %v382_v35 = vsel %vm377_vm1, %v381_v33, %v369_v31  ;;  %v378_v36 = vsel %vm377_vm1, %v376_v34, %v357_v32 }
 0x123   : > { %v373_v37 = vpop.permute.xlu1 %372  ;;  %v361_v38 = vpop.permute.xlu0 %360 }
 0x124   : > { %v383_v39 = vsel %vm379_vm2, %v382_v35, %v373_v37  ;;  %v380_v40 = vsel %vm379_vm2, %v378_v36, %v361_v38 }
 0x125   : > { %385 = vst [vmem:[%s134_s8 + $0x8] sm:$0xff] %v383_v39  ;;  %384 = vst [vmem:[%s134_s8] sm:$0xff] %v380_v40 }
 0x126   : > { %530 = shalt.err (!%p527_p3)
}
 0x127   : > { %s531_s26 = scalar_lea.hbm %s678_s21, 256  ;;  %s535_s29 = scalar_lea.hbm %s722_s2, 512 }
 0x128   : > { %p532_p4 = scmp.ne.s32.totalorder %s678_s21, %s531_s26  ;;  %p536_p9 = scmp.lt.u32.totalorder %s678_s21, %s722_s2 }
 0x129   : > { %p537_p10 = scmp.lt.u32.totalorder %s535_s29, %s531_s26  ;;  %p539_p12 = scmp.lt.u32.totalorder %s531_s26, %s678_s21 }
 0x12a   : > { %p533_p7 = pnand %p532_p4, %p640_p5 }
 0x12b   : > { %p538_p11 = por %p537_p10, %p536_p9 }
 0x12c   : > { %p534_p8 = pneg %p533_p7 }
 0x12d   : > { %p540_p13 = por %p539_p12, %p538_p11 }
 0x12f   : > { %p541_p0 = pnand %p540_p13, %p534_p8 }
 0x131   : > { %544 = shalt.err (!%p541_p0)
}
 0x132   : > { %473 = dma.vmem_to_hbm [thread:$0]  (%p640_p5), %s680_s14, 256, %s678_s21, %s387_s13  }
 0x133 PF: > { %p479_p1 = scmp.ge.s32.totalorder %s579_s12, 2  ;;  %s413_s4 = sand.u32 1, %s567_s9  }
 0x134   : > { %s414_s5 = scalar_lea.sflag [#allocation3], %s413_s4 }
 0x135   : > { %p476_p2 = pnand %p479_p1, %p644_p6 }
 0x137   : > { %562 = dma.done.wait (!%p476_p2), %s414_s5, 256  }
 0x138   : > { %564 = vsyncadd (!%p476_p2), %s414_s5, 4294967040  ;;  %p12_p3 = scmp.ge.s32.totalorder %s627_s15, 4   ;;  %s725_s9 = smov %s571_s10 }
 0x139   : > { %s726_s10 = smov %s575_s11  ;;  %s727_s11 = smov %s638_s18 }
 0x13a   : > { %s728_s12 = smov %s627_s15  ;;  %14 = sbr.rel (!%p12_p3) target bundleno = 3 (0x3), region = 64 }
 0x141   :  { %419 = vsyncpa [#allocation3], 1 }
 0x142   :  { %421 = vsyncpa [#allocation3 + $0x1], 1 }

</bundles_post_ra>
